<compile_context>
chip_gen: v6e
topology: v6e:2x2x1
jax: 0.10.0
libtpu: 0.0.40
codegen_flags: <defaults>
</compile_context>

<pallas_src>
import functools

import jax
import jax.numpy as jnp
from jax import lax
from jax.experimental import pallas as pl
from jax.experimental.pallas import tpu as pltpu

# Model hyper-parameters (small, consistent with the module's __init__).
D_MODEL = 32
NHEAD = 4
DIM_FF = 64
SEQ = 8
BATCH = 2
EPS = 1e-5


def _layernorm(x, gamma, beta):
    mu = jnp.mean(x, axis=-1, keepdims=True)
    var = jnp.mean((x - mu) * (x - mu), axis=-1, keepdims=True)
    return (x - mu) * lax.rsqrt(var + EPS) * gamma + beta


def encoder_layer_kernel(x_ref, w_qkv_ref, wo_t_ref, w1_t_ref, w2_t_ref,
                         head_sel_ref, mask_ref,
                         b_qkv_ref, bo_ref, b1_ref, b2_ref,
                         g1_ref, bt1_ref, g2_ref, bt2_ref,
                         o_ref, *, nhead):
    x = x_ref[...]                                   # (NS, E), NS = S*N
    NS, E = x.shape
    H = nhead

    # --- fused in_proj: one MXU push, 1/sqrt(Dh) scale folded into Wq/bq ---
    qkv = jnp.dot(x, w_qkv_ref[...], preferred_element_type=jnp.float32)
    qkv = qkv + b_qkv_ref[...]
    q = qkv[:, :E]
    k = qkv[:, E:2 * E]
    v = qkv[:, 2 * E:]

    # --- all-head attention via block-structured operands -------------------
    # head_sel (H*NS, E): ones on block h = rows [h*NS,(h+1)*NS) x cols
    # [h*Dh,(h+1)*Dh).  Sublane-tiling k/v and masking with head_sel builds the
    # block "stack", so a single matmul yields every head's scores at once,
    # lane-segmented: s[:, h*NS:(h+1)*NS] = Q_h @ K_h^T.
    head_sel = head_sel_ref[...]                     # (H*NS, E) in {0, 1}
    k_bd = jnp.tile(k, (H, 1)) * head_sel            # (H*NS, E)
    v_bd = jnp.tile(v, (H, 1)) * head_sel            # (H*NS, E)

    s = lax.dot_general(q, k_bd, (((1,), (1,)), ((), ())),
                        preferred_element_type=jnp.float32)   # (NS, H*NS)
    s = s + mask_ref[...]        # additive {0, -1e30} same-batch mask per head

    # Row max over all head segments: any per-row constant >= each segment's
    # max keeps exp() in range and cancels in the per-head normalization.
    s = s - jnp.max(s, axis=-1, keepdims=True)
    e = jnp.exp(s)                                   # masked entries exp to 0

    # Per-head softmax denominators, already broadcast over each head's output
    # lanes: (e @ head_sel)[:, h*Dh:(h+1)*Dh] = sum_j e_h[:, j].
    # NOTE: every row has >= SEQ unmasked keys per head so l > 0; a fully
    # masked row would give 0/0 if this were generalized to padding masks.
    l = jnp.dot(e, head_sel, preferred_element_type=jnp.float32)     # (NS, E)
    o = jnp.dot(e, v_bd, preferred_element_type=jnp.float32) / l     # (NS, E)

    attn = jnp.dot(o, wo_t_ref[...], preferred_element_type=jnp.float32)
    attn = attn + bo_ref[...]

    # residual + norm1 (dropout1 = identity in eval mode)
    y = _layernorm(x + attn, g1_ref[...], bt1_ref[...])

    # --- feed-forward (dropout = identity) ---
    h1 = jnp.dot(y, w1_t_ref[...], preferred_element_type=jnp.float32)
    h1 = jnp.maximum(h1 + b1_ref[...], 0.0)
    h2 = jnp.dot(h1, w2_t_ref[...], preferred_element_type=jnp.float32)
    h2 = h2 + b2_ref[...]

    # residual + norm2 (dropout2 = identity)
    o_ref[...] = _layernorm(y + h2, g2_ref[...], bt2_ref[...])


def pack_params(params, seq, batch):
    """One-time host-side parameter fusion / transposition plus the static
    attention constants.  Weights are static across calls, so this is executed
    once and the packed arrays are reused by every forward."""
    E, F, H = D_MODEL, DIM_FF, NHEAD
    Dh = E // H
    NS = seq * batch
    scale = 1.0 / float(Dh) ** 0.5

    packed = {
        # in_proj^T with the 1/sqrt(Dh) query scale folded into Wq / bq.
        "w_qkv": jnp.concatenate(
            [params["wq"] * scale, params["wk"], params["wv"]], axis=0).T,  # (E, 3E)
        "b_qkv": jnp.concatenate(
            [params["bq"] * scale, params["bk"], params["bv"]], axis=1),    # (1, 3E)
        "wo_t": params["wo"].T, "bo": params["bo"],
        "w1_t": params["w1"].T, "b1": params["b1"],
        "w2_t": params["w2"].T, "b2": params["b2"],
        "g1": params["g1"], "bt1": params["bt1"],
        "g2": params["g2"], "bt2": params["bt2"],
    }

    # Static attention constants (shape-only; cached with the weights).
    r = jnp.arange(H * NS)[:, None]
    c = jnp.arange(E)[None, :]
    packed["head_sel"] = ((r // NS) == (c // Dh)).astype(jnp.float32)   # (H*NS, E)

    i = jnp.arange(NS)[:, None]
    j = jnp.arange(NS)[None, :]
    base = jnp.where((i % batch) == (j % batch), 0.0, -1e30)
    packed["mask"] = jnp.tile(base.astype(jnp.float32), (1, H))         # (NS, H*NS)
    return packed


def transformer_encoder_layer(src, packed):
    """src: (S, N, E) float32 (PyTorch nn.MultiheadAttention layout)."""
    S, N, E = src.shape
    NS = S * N

    # S-major flatten (plain reshape, no transpose); row r <-> (s=r//N, n=r%N).
    x = src.reshape(NS, E)

    operands = (x,
                packed["w_qkv"], packed["wo_t"], packed["w1_t"], packed["w2_t"],
                packed["head_sel"], packed["mask"],
                packed["b_qkv"], packed["bo"], packed["b1"], packed["b2"],
                packed["g1"], packed["bt1"], packed["g2"], packed["bt2"])

    kernel = functools.partial(encoder_layer_kernel, nhead=NHEAD)

    # Single grid step: the whole working set is a few KiB, so it lives in VMEM
    # at once and the per-step fixed overhead is paid exactly once.  (On v7x a
    # 'parallel' row-grid would only pay off at much larger N*S.)
    out = pl.pallas_call(
        kernel,
        out_shape=jax.ShapeDtypeStruct((NS, E), jnp.float32),
        grid_spec=pltpu.PrefetchScalarGridSpec(
            num_scalar_prefetch=0,
            grid=(1,),
            in_specs=[pl.BlockSpec(op.shape, lambda i: (0, 0))
                      for op in operands],
            out_specs=pl.BlockSpec((NS, E), lambda i: (0, 0)),
        ),
        compiler_params=pltpu.CompilerParams(
            dimension_semantics=("arbitrary",)),
    )(*operands)

    return out.reshape(S, N, E)   # inverse is also a plain reshape


# ---------------- pure-JAX reference (for correctness check) ----------------
def ref_forward(src, p):
    S, N, E = src.shape
    H, Dh = NHEAD, E // NHEAD
    q = src @ p["wq"].T + p["bq"][0]
    k = src @ p["wk"].T + p["bk"][0]
    v = src @ p["wv"].T + p["bv"][0]
    qh = q.reshape(S, N, H, Dh).transpose(1, 2, 0, 3)   # (N,H,S,Dh)
    kh = k.reshape(S, N, H, Dh).transpose(1, 2, 0, 3)
    vh = v.reshape(S, N, H, Dh).transpose(1, 2, 0, 3)
    s = jnp.einsum("nhqd,nhkd->nhqk", qh, kh) / jnp.sqrt(jnp.float32(Dh))
    a = jax.nn.softmax(s, axis=-1)
    o = jnp.einsum("nhqk,nhkd->nhqd", a, vh)
    o = o.transpose(2, 0, 1, 3).reshape(S, N, E)
    attn = o @ p["wo"].T + p["bo"][0]
    y = _layernorm(src + attn, p["g1"][0], p["bt1"][0])
    h = jax.nn.relu(y @ p["w1"].T + p["b1"][0])
    z = y + (h @ p["w2"].T + p["b2"][0])
    return _layernorm(z, p["g2"][0], p["bt2"][0])


def make_params(key):
    ks = jax.random.split(key, 16)
    E, F = D_MODEL, DIM_FF
    n = lambda k, shape: (0.1 * jax.random.normal(k, shape)).astype(jnp.float32)
    return {
        "wq": n(ks[0], (E, E)), "wk": n(ks[1], (E, E)), "wv": n(ks[2], (E, E)),
        "bq": n(ks[3], (1, E)), "bk": n(ks[4], (1, E)), "bv": n(ks[5], (1, E)),
        "wo": n(ks[6], (E, E)), "bo": n(ks[7], (1, E)),
        "w1": n(ks[8], (F, E)), "b1": n(ks[9], (1, F)),
        "w2": n(ks[10], (E, F)), "b2": n(ks[11], (1, E)),
        "g1": jnp.ones((1, E), jnp.float32), "bt1": jnp.zeros((1, E), jnp.float32),
        "g2": jnp.ones((1, E), jnp.float32), "bt2": jnp.zeros((1, E), jnp.float32),
    }


if __name__ == "__main__":
    key = jax.random.PRNGKey(0)
    k_src, k_par = jax.random.split(key)
    src = jax.random.normal(k_src, (SEQ, BATCH, D_MODEL), dtype=jnp.float32)
    params = make_params(k_par)

    packed = pack_params(params, SEQ, BATCH)   # one-time; cached across calls

    out = jax.block_until_ready(transformer_encoder_layer(src, packed))
    ref = jax.block_until_ready(ref_forward(src, params))

    assert out.shape == (SEQ, BATCH, D_MODEL)
    # Exact softmax normalization restored -> tight tolerance again.
    assert jnp.allclose(out, ref, atol=1e-4, rtol=1e-4), "mismatch vs reference"
    print("KERNEL_OK")
</pallas_src>

<mosaic_0001>
module attributes {stable_mosaic.version = 11 : i64} {
  func.func @encoder_layer_kernel(%arg0: i32, %arg1: memref<16x32xf32, #tpu.memory_space<vmem>>, %arg2: memref<32x96xf32, #tpu.memory_space<vmem>>, %arg3: memref<32x32xf32, #tpu.memory_space<vmem>>, %arg4: memref<32x64xf32, #tpu.memory_space<vmem>>, %arg5: memref<64x32xf32, #tpu.memory_space<vmem>>, %arg6: memref<64x32xf32, #tpu.memory_space<vmem>>, %arg7: memref<16x64xf32, #tpu.memory_space<vmem>>, %arg8: memref<1x96xf32, #tpu.memory_space<vmem>>, %arg9: memref<1x32xf32, #tpu.memory_space<vmem>>, %arg10: memref<1x64xf32, #tpu.memory_space<vmem>>, %arg11: memref<1x32xf32, #tpu.memory_space<vmem>>, %arg12: memref<1x32xf32, #tpu.memory_space<vmem>>, %arg13: memref<1x32xf32, #tpu.memory_space<vmem>>, %arg14: memref<1x32xf32, #tpu.memory_space<vmem>>, %arg15: memref<1x32xf32, #tpu.memory_space<vmem>>, %arg16: memref<16x32xf32, #tpu.memory_space<vmem>>) attributes {dimension_semantics = [#tpu.dimension_semantics<arbitrary>], iteration_bounds = array<i64: 1>, scalar_prefetch = 0 : i64, scratch_operands = 0 : i64, tpu.core_type = #tpu.core_type<tc>, window_params = [{pipeline_mode = #tpu.pipeline_mode<synchronous>, transform_indices = @transform_0, window_bounds = array<i64: 16, 32>}, {pipeline_mode = #tpu.pipeline_mode<synchronous>, transform_indices = @transform_1, window_bounds = array<i64: 32, 96>}, {pipeline_mode = #tpu.pipeline_mode<synchronous>, transform_indices = @transform_2, window_bounds = array<i64: 32, 32>}, {pipeline_mode = #tpu.pipeline_mode<synchronous>, transform_indices = @transform_3, window_bounds = array<i64: 32, 64>}, {pipeline_mode = #tpu.pipeline_mode<synchronous>, transform_indices = @transform_4, window_bounds = array<i64: 64, 32>}, {pipeline_mode = #tpu.pipeline_mode<synchronous>, transform_indices = @transform_5, window_bounds = array<i64: 64, 32>}, {pipeline_mode = #tpu.pipeline_mode<synchronous>, transform_indices = @transform_6, window_bounds = array<i64: 16, 64>}, {pipeline_mode = #tpu.pipeline_mode<synchronous>, transform_indices = @transform_7, window_bounds = array<i64: 1, 96>}, {pipeline_mode = #tpu.pipeline_mode<synchronous>, transform_indices = @transform_8, window_bounds = array<i64: 1, 32>}, {pipeline_mode = #tpu.pipeline_mode<synchronous>, transform_indices = @transform_9, window_bounds = array<i64: 1, 64>}, {pipeline_mode = #tpu.pipeline_mode<synchronous>, transform_indices = @transform_10, window_bounds = array<i64: 1, 32>}, {pipeline_mode = #tpu.pipeline_mode<synchronous>, transform_indices = @transform_11, window_bounds = array<i64: 1, 32>}, {pipeline_mode = #tpu.pipeline_mode<synchronous>, transform_indices = @transform_12, window_bounds = array<i64: 1, 32>}, {pipeline_mode = #tpu.pipeline_mode<synchronous>, transform_indices = @transform_13, window_bounds = array<i64: 1, 32>}, {pipeline_mode = #tpu.pipeline_mode<synchronous>, transform_indices = @transform_14, window_bounds = array<i64: 1, 32>}, {pipeline_mode = #tpu.pipeline_mode<synchronous>, transform_indices = @transform_15, window_bounds = array<i64: 16, 32>}]} {
    %c0 = arith.constant 0 : index
    %c0_0 = arith.constant 0 : index
    %0 = vector.load %arg1[%c0, %c0_0] : memref<16x32xf32, #tpu.memory_space<vmem>>, vector<16x32xf32>
    %c0_1 = arith.constant 0 : index
    %c0_2 = arith.constant 0 : index
    %1 = vector.load %arg2[%c0_1, %c0_2] : memref<32x96xf32, #tpu.memory_space<vmem>>, vector<32x96xf32>
    %cst = arith.constant dense<0.000000e+00> : vector<16x96xf32>
    %2 = tpu.matmul %0, %1, %cst {dimension_numbers = #tpu.dot_dimension_numbers<[1], [0], [0], [1], [0, 0, 1, 1], [], []>} : vector<16x32xf32>, vector<32x96xf32>, vector<16x96xf32> -> vector<16x96xf32>
    %c0_3 = arith.constant 0 : index
    %c0_4 = arith.constant 0 : index
    %3 = vector.load %arg8[%c0_3, %c0_4] : memref<1x96xf32, #tpu.memory_space<vmem>>, vector<1x96xf32>
    %4 = vector.broadcast %3 : vector<1x96xf32> to vector<16x96xf32>
    %5 = arith.addf %2, %4 : vector<16x96xf32>
    %6 = vector.extract_strided_slice %5 {offsets = [0, 0], sizes = [16, 32], strides = [1, 1]} : vector<16x96xf32> to vector<16x32xf32>
    %7 = vector.extract_strided_slice %5 {offsets = [0, 32], sizes = [16, 32], strides = [1, 1]} : vector<16x96xf32> to vector<16x32xf32>
    %8 = vector.extract_strided_slice %5 {offsets = [0, 64], sizes = [16, 32], strides = [1, 1]} : vector<16x96xf32> to vector<16x32xf32>
    %c0_5 = arith.constant 0 : index
    %c0_6 = arith.constant 0 : index
    %9 = vector.load %arg6[%c0_5, %c0_6] : memref<64x32xf32, #tpu.memory_space<vmem>>, vector<64x32xf32>
    %10 = tpu.concatenate %7, %7, %7, %7 in 0 : vector<16x32xf32>, vector<16x32xf32>, vector<16x32xf32>, vector<16x32xf32> -> vector<64x32xf32>
    %11 = arith.mulf %10, %9 : vector<64x32xf32>
    %12 = tpu.concatenate %8, %8, %8, %8 in 0 : vector<16x32xf32>, vector<16x32xf32>, vector<16x32xf32>, vector<16x32xf32> -> vector<64x32xf32>
    %13 = arith.mulf %12, %9 : vector<64x32xf32>
    %cst_7 = arith.constant dense<0.000000e+00> : vector<16x64xf32>
    %14 = tpu.matmul %6, %11, %cst_7 {dimension_numbers = #tpu.dot_dimension_numbers<[1], [1], [0], [0], [0, 0, 1, 0], [], []>} : vector<16x32xf32>, vector<64x32xf32>, vector<16x64xf32> -> vector<16x64xf32>
    %c0_8 = arith.constant 0 : index
    %c0_9 = arith.constant 0 : index
    %15 = vector.load %arg7[%c0_8, %c0_9] : memref<16x64xf32, #tpu.memory_space<vmem>>, vector<16x64xf32>
    %16 = arith.addf %14, %15 : vector<16x64xf32>
    %cst_10 = arith.constant dense<0xFF800000> : vector<16xf32>
    %17 = vector.multi_reduction <maximumf>, %16, %cst_10 [1] : vector<16x64xf32> to vector<16xf32>
    %18 = vector.shape_cast %17 : vector<16xf32> to vector<16x1xf32>
    %19 = vector.broadcast %18 : vector<16x1xf32> to vector<16x64xf32>
    %20 = arith.subf %16, %19 : vector<16x64xf32>
    %21 = math.exp %20 : vector<16x64xf32>
    %cst_11 = arith.constant dense<0.000000e+00> : vector<16x32xf32>
    %22 = tpu.matmul %21, %9, %cst_11 {dimension_numbers = #tpu.dot_dimension_numbers<[1], [0], [0], [1], [0, 0, 1, 1], [], []>} : vector<16x64xf32>, vector<64x32xf32>, vector<16x32xf32> -> vector<16x32xf32>
    %cst_12 = arith.constant dense<0.000000e+00> : vector<16x32xf32>
    %23 = tpu.matmul %21, %13, %cst_12 {dimension_numbers = #tpu.dot_dimension_numbers<[1], [0], [0], [1], [0, 0, 1, 1], [], []>} : vector<16x64xf32>, vector<64x32xf32>, vector<16x32xf32> -> vector<16x32xf32>
    %24 = arith.divf %23, %22 : vector<16x32xf32>
    %c0_13 = arith.constant 0 : index
    %c0_14 = arith.constant 0 : index
    %25 = vector.load %arg3[%c0_13, %c0_14] : memref<32x32xf32, #tpu.memory_space<vmem>>, vector<32x32xf32>
    %cst_15 = arith.constant dense<0.000000e+00> : vector<16x32xf32>
    %26 = tpu.matmul %24, %25, %cst_15 {dimension_numbers = #tpu.dot_dimension_numbers<[1], [0], [0], [1], [0, 0, 1, 1], [], []>} : vector<16x32xf32>, vector<32x32xf32>, vector<16x32xf32> -> vector<16x32xf32>
    %c0_16 = arith.constant 0 : index
    %c0_17 = arith.constant 0 : index
    %27 = vector.load %arg9[%c0_16, %c0_17] : memref<1x32xf32, #tpu.memory_space<vmem>>, vector<1x32xf32>
    %28 = vector.broadcast %27 : vector<1x32xf32> to vector<16x32xf32>
    %29 = arith.addf %26, %28 : vector<16x32xf32>
    %30 = arith.addf %0, %29 : vector<16x32xf32>
    %c0_18 = arith.constant 0 : index
    %c0_19 = arith.constant 0 : index
    %31 = vector.load %arg12[%c0_18, %c0_19] : memref<1x32xf32, #tpu.memory_space<vmem>>, vector<1x32xf32>
    %c0_20 = arith.constant 0 : index
    %c0_21 = arith.constant 0 : index
    %32 = vector.load %arg13[%c0_20, %c0_21] : memref<1x32xf32, #tpu.memory_space<vmem>>, vector<1x32xf32>
    %cst_22 = arith.constant dense<0.000000e+00> : vector<16xf32>
    %33 = vector.multi_reduction <add>, %30, %cst_22 [1] : vector<16x32xf32> to vector<16xf32>
    %34 = vector.shape_cast %33 : vector<16xf32> to vector<16x1xf32>
    %cst_23 = arith.constant 3.200000e+01 : f32
    %35 = vector.broadcast %cst_23 : f32 to vector<16x1xf32>
    %36 = arith.divf %34, %35 : vector<16x1xf32>
    %37 = vector.broadcast %36 : vector<16x1xf32> to vector<16x32xf32>
    %38 = arith.subf %30, %37 : vector<16x32xf32>
    %39 = vector.broadcast %36 : vector<16x1xf32> to vector<16x32xf32>
    %40 = arith.subf %30, %39 : vector<16x32xf32>
    %41 = arith.mulf %38, %40 : vector<16x32xf32>
    %cst_24 = arith.constant dense<0.000000e+00> : vector<16xf32>
    %42 = vector.multi_reduction <add>, %41, %cst_24 [1] : vector<16x32xf32> to vector<16xf32>
    %43 = vector.shape_cast %42 : vector<16xf32> to vector<16x1xf32>
    %cst_25 = arith.constant 3.200000e+01 : f32
    %44 = vector.broadcast %cst_25 : f32 to vector<16x1xf32>
    %45 = arith.divf %43, %44 : vector<16x1xf32>
    %46 = vector.broadcast %36 : vector<16x1xf32> to vector<16x32xf32>
    %47 = arith.subf %30, %46 : vector<16x32xf32>
    %cst_26 = arith.constant 9.99999974E-6 : f32
    %48 = vector.broadcast %cst_26 : f32 to vector<16x1xf32>
    %49 = arith.addf %45, %48 : vector<16x1xf32>
    %50 = math.rsqrt %49 : vector<16x1xf32>
    %51 = vector.broadcast %50 : vector<16x1xf32> to vector<16x32xf32>
    %52 = arith.mulf %47, %51 : vector<16x32xf32>
    %53 = vector.broadcast %31 : vector<1x32xf32> to vector<16x32xf32>
    %54 = arith.mulf %52, %53 : vector<16x32xf32>
    %55 = vector.broadcast %32 : vector<1x32xf32> to vector<16x32xf32>
    %56 = arith.addf %54, %55 : vector<16x32xf32>
    %c0_27 = arith.constant 0 : index
    %c0_28 = arith.constant 0 : index
    %57 = vector.load %arg4[%c0_27, %c0_28] : memref<32x64xf32, #tpu.memory_space<vmem>>, vector<32x64xf32>
    %cst_29 = arith.constant dense<0.000000e+00> : vector<16x64xf32>
    %58 = tpu.matmul %56, %57, %cst_29 {dimension_numbers = #tpu.dot_dimension_numbers<[1], [0], [0], [1], [0, 0, 1, 1], [], []>} : vector<16x32xf32>, vector<32x64xf32>, vector<16x64xf32> -> vector<16x64xf32>
    %c0_30 = arith.constant 0 : index
    %c0_31 = arith.constant 0 : index
    %59 = vector.load %arg10[%c0_30, %c0_31] : memref<1x64xf32, #tpu.memory_space<vmem>>, vector<1x64xf32>
    %60 = vector.broadcast %59 : vector<1x64xf32> to vector<16x64xf32>
    %61 = arith.addf %58, %60 : vector<16x64xf32>
    %cst_32 = arith.constant 0.000000e+00 : f32
    %62 = vector.broadcast %cst_32 : f32 to vector<16x64xf32>
    %63 = arith.maximumf %61, %62 : vector<16x64xf32>
    %c0_33 = arith.constant 0 : index
    %c0_34 = arith.constant 0 : index
    %64 = vector.load %arg5[%c0_33, %c0_34] : memref<64x32xf32, #tpu.memory_space<vmem>>, vector<64x32xf32>
    %cst_35 = arith.constant dense<0.000000e+00> : vector<16x32xf32>
    %65 = tpu.matmul %63, %64, %cst_35 {dimension_numbers = #tpu.dot_dimension_numbers<[1], [0], [0], [1], [0, 0, 1, 1], [], []>} : vector<16x64xf32>, vector<64x32xf32>, vector<16x32xf32> -> vector<16x32xf32>
    %c0_36 = arith.constant 0 : index
    %c0_37 = arith.constant 0 : index
    %66 = vector.load %arg11[%c0_36, %c0_37] : memref<1x32xf32, #tpu.memory_space<vmem>>, vector<1x32xf32>
    %67 = vector.broadcast %66 : vector<1x32xf32> to vector<16x32xf32>
    %68 = arith.addf %65, %67 : vector<16x32xf32>
    %69 = arith.addf %56, %68 : vector<16x32xf32>
    %c0_38 = arith.constant 0 : index
    %c0_39 = arith.constant 0 : index
    %70 = vector.load %arg14[%c0_38, %c0_39] : memref<1x32xf32, #tpu.memory_space<vmem>>, vector<1x32xf32>
    %c0_40 = arith.constant 0 : index
    %c0_41 = arith.constant 0 : index
    %71 = vector.load %arg15[%c0_40, %c0_41] : memref<1x32xf32, #tpu.memory_space<vmem>>, vector<1x32xf32>
    %cst_42 = arith.constant dense<0.000000e+00> : vector<16xf32>
    %72 = vector.multi_reduction <add>, %69, %cst_42 [1] : vector<16x32xf32> to vector<16xf32>
    %73 = vector.shape_cast %72 : vector<16xf32> to vector<16x1xf32>
    %cst_43 = arith.constant 3.200000e+01 : f32
    %74 = vector.broadcast %cst_43 : f32 to vector<16x1xf32>
    %75 = arith.divf %73, %74 : vector<16x1xf32>
    %76 = vector.broadcast %75 : vector<16x1xf32> to vector<16x32xf32>
    %77 = arith.subf %69, %76 : vector<16x32xf32>
    %78 = vector.broadcast %75 : vector<16x1xf32> to vector<16x32xf32>
    %79 = arith.subf %69, %78 : vector<16x32xf32>
    %80 = arith.mulf %77, %79 : vector<16x32xf32>
    %cst_44 = arith.constant dense<0.000000e+00> : vector<16xf32>
    %81 = vector.multi_reduction <add>, %80, %cst_44 [1] : vector<16x32xf32> to vector<16xf32>
    %82 = vector.shape_cast %81 : vector<16xf32> to vector<16x1xf32>
    %cst_45 = arith.constant 3.200000e+01 : f32
    %83 = vector.broadcast %cst_45 : f32 to vector<16x1xf32>
    %84 = arith.divf %82, %83 : vector<16x1xf32>
    %85 = vector.broadcast %75 : vector<16x1xf32> to vector<16x32xf32>
    %86 = arith.subf %69, %85 : vector<16x32xf32>
    %cst_46 = arith.constant 9.99999974E-6 : f32
    %87 = vector.broadcast %cst_46 : f32 to vector<16x1xf32>
    %88 = arith.addf %84, %87 : vector<16x1xf32>
    %89 = math.rsqrt %88 : vector<16x1xf32>
    %90 = vector.broadcast %89 : vector<16x1xf32> to vector<16x32xf32>
    %91 = arith.mulf %86, %90 : vector<16x32xf32>
    %92 = vector.broadcast %70 : vector<1x32xf32> to vector<16x32xf32>
    %93 = arith.mulf %91, %92 : vector<16x32xf32>
    %94 = vector.broadcast %71 : vector<1x32xf32> to vector<16x32xf32>
    %95 = arith.addf %93, %94 : vector<16x32xf32>
    %c0_47 = arith.constant 0 : index
    %c0_48 = arith.constant 0 : index
    %96 = vector.load %arg16[%c0_47, %c0_48] : memref<16x32xf32, #tpu.memory_space<vmem>>, vector<16x32xf32>
    tpu.vector_store %arg16[%c0_47, %c0_48], %95 {strides = array<i32>} : memref<16x32xf32, #tpu.memory_space<vmem>>, vector<16x32xf32>,
    return
  }
  func.func @transform_0(%arg0: i32) -> (i32, i32) {
    %c0_i32 = arith.constant 0 : i32
    %c0_i32_0 = arith.constant 0 : i32
    %c0_i32_1 = arith.constant 0 : i32
    return %c0_i32, %c0_i32_0 : i32, i32
  }
  func.func @transform_1(%arg0: i32) -> (i32, i32) {
    %c0_i32 = arith.constant 0 : i32
    %c0_i32_0 = arith.constant 0 : i32
    %c0_i32_1 = arith.constant 0 : i32
    return %c0_i32, %c0_i32_0 : i32, i32
  }
  func.func @transform_2(%arg0: i32) -> (i32, i32) {
    %c0_i32 = arith.constant 0 : i32
    %c0_i32_0 = arith.constant 0 : i32
    %c0_i32_1 = arith.constant 0 : i32
    return %c0_i32, %c0_i32_0 : i32, i32
  }
  func.func @transform_3(%arg0: i32) -> (i32, i32) {
    %c0_i32 = arith.constant 0 : i32
    %c0_i32_0 = arith.constant 0 : i32
    %c0_i32_1 = arith.constant 0 : i32
    return %c0_i32, %c0_i32_0 : i32, i32
  }
  func.func @transform_4(%arg0: i32) -> (i32, i32) {
    %c0_i32 = arith.constant 0 : i32
    %c0_i32_0 = arith.constant 0 : i32
    %c0_i32_1 = arith.constant 0 : i32
    return %c0_i32, %c0_i32_0 : i32, i32
  }
  func.func @transform_5(%arg0: i32) -> (i32, i32) {
    %c0_i32 = arith.constant 0 : i32
    %c0_i32_0 = arith.constant 0 : i32
    %c0_i32_1 = arith.constant 0 : i32
    return %c0_i32, %c0_i32_0 : i32, i32
  }
  func.func @transform_6(%arg0: i32) -> (i32, i32) {
    %c0_i32 = arith.constant 0 : i32
    %c0_i32_0 = arith.constant 0 : i32
    %c0_i32_1 = arith.constant 0 : i32
    return %c0_i32, %c0_i32_0 : i32, i32
  }
  func.func @transform_7(%arg0: i32) -> (i32, i32) {
    %c0_i32 = arith.constant 0 : i32
    %c0_i32_0 = arith.constant 0 : i32
    %c0_i32_1 = arith.constant 0 : i32
    return %c0_i32, %c0_i32_0 : i32, i32
  }
  func.func @transform_8(%arg0: i32) -> (i32, i32) {
    %c0_i32 = arith.constant 0 : i32
    %c0_i32_0 = arith.constant 0 : i32
    %c0_i32_1 = arith.constant 0 : i32
    return %c0_i32, %c0_i32_0 : i32, i32
  }
  func.func @transform_9(%arg0: i32) -> (i32, i32) {
    %c0_i32 = arith.constant 0 : i32
    %c0_i32_0 = arith.constant 0 : i32
    %c0_i32_1 = arith.constant 0 : i32
    return %c0_i32, %c0_i32_0 : i32, i32
  }
  func.func @transform_10(%arg0: i32) -> (i32, i32) {
    %c0_i32 = arith.constant 0 : i32
    %c0_i32_0 = arith.constant 0 : i32
    %c0_i32_1 = arith.constant 0 : i32
    return %c0_i32, %c0_i32_0 : i32, i32
  }
  func.func @transform_11(%arg0: i32) -> (i32, i32) {
    %c0_i32 = arith.constant 0 : i32
    %c0_i32_0 = arith.constant 0 : i32
    %c0_i32_1 = arith.constant 0 : i32
    return %c0_i32, %c0_i32_0 : i32, i32
  }
  func.func @transform_12(%arg0: i32) -> (i32, i32) {
    %c0_i32 = arith.constant 0 : i32
    %c0_i32_0 = arith.constant 0 : i32
    %c0_i32_1 = arith.constant 0 : i32
    return %c0_i32, %c0_i32_0 : i32, i32
  }
  func.func @transform_13(%arg0: i32) -> (i32, i32) {
    %c0_i32 = arith.constant 0 : i32
    %c0_i32_0 = arith.constant 0 : i32
    %c0_i32_1 = arith.constant 0 : i32
    return %c0_i32, %c0_i32_0 : i32, i32
  }
  func.func @transform_14(%arg0: i32) -> (i32, i32) {
    %c0_i32 = arith.constant 0 : i32
    %c0_i32_0 = arith.constant 0 : i32
    %c0_i32_1 = arith.constant 0 : i32
    return %c0_i32, %c0_i32_0 : i32, i32
  }
  func.func @transform_15(%arg0: i32) -> (i32, i32) {
    %c0_i32 = arith.constant 0 : i32
    %c0_i32_0 = arith.constant 0 : i32
    %c0_i32_1 = arith.constant 0 : i32
    return %c0_i32, %c0_i32_0 : i32, i32
  }
}

</mosaic_0001>

<bundles_post_ra>
// kernel: tpu_custom_call.1
= control target key start
LH: loop header
LB: loop body
LE: loop exit
PB: predicated region body
PF: predicated region fallthrough
CT: control target
= control target key end

     0   :  { %vm64_vm0 = vcmask 261120   ;;  %s1188_s30 = smov 32   ;;  %s1509_s0 = inlined_call_operand.vmem [shape: f32[16,32], index: 0, kind: input, shape index: {}]   ;;  %s1510_s1 = inlined_call_operand.vmem [shape: f32[32,96], index: 1, kind: input, shape index: {}]   ;;  %s1511_s2 = inlined_call_operand.vmem [shape: f32[32,32], index: 2, kind: input, shape index: {}]   ;;  %s1512_s3 = inlined_call_operand.vmem [shape: f32[32,64], index: 3, kind: input, shape index: {}]   ;;  %s1513_s4 = inlined_call_operand.vmem [shape: f32[64,32], index: 4, kind: input, shape index: {}]   ;;  %s1514_s5 = inlined_call_operand.vmem [shape: f32[64,32], index: 5, kind: input, shape index: {}]   ;;  %s1515_s6 = inlined_call_operand.vmem [shape: f32[16,64], index: 6, kind: input, shape index: {}]   ;;  %s1516_s7 = inlined_call_operand.vmem [shape: f32[1,96], index: 7, kind: input, shape index: {}]   ;;  %s1517_s8 = inlined_call_operand.vmem [shape: f32[1,32], index: 8, kind: input, shape index: {}]   ;;  %s1518_s9 = inlined_call_operand.vmem [shape: f32[1,64], index: 9, kind: input, shape index: {}]   ;;  %s1519_s10 = inlined_call_operand.vmem [shape: f32[1,32], index: 10, kind: input, shape index: {}]   ;;  %s1520_s11 = inlined_call_operand.vmem [shape: f32[1,32], index: 11, kind: input, shape index: {}]   ;;  %s1521_s12 = inlined_call_operand.vmem [shape: f32[1,32], index: 12, kind: input, shape index: {}]   ;;  %s1522_s13 = inlined_call_operand.vmem [shape: f32[1,32], index: 13, kind: input, shape index: {}]   ;;  %s1523_s14 = inlined_call_operand.vmem [shape: f32[1,32], index: 14, kind: input, shape index: {}]   ;;  %s1524_s15 = inlined_call_operand.hbm [shape: f32[16,32], index: 15, kind: output, shape index: {}]  }
   0x1   :  { %v56_v0 = vld [vmem:[%s1510_s1 + $0x18] sm:$0xff]  ;;  %v55_v1 = vld [vmem:[%s1510_s1 + $0x10] sm:$0xff]  ;;  %v1283_v2 = vld [vmem:[%s1509_s0] sm:$0xff] }
   0x2   :  { %1035 = vmatprep.subr.mxu0 %v56_v0  ;;  %v54_v3 = vld [vmem:[%s1510_s1 + $0x8] sm:$0xff]  ;;  %1043 = vmatprep.mubr.msk.f32.mxu0 %vm64_vm0, %v1283_v2  ;;  %v1293_v4 = vld [vmem:[%s1514_s5 + $0x38] sm:$0xff]  ;;  %v53_v6 = vld [vmem:[%s1510_s1] sm:$0xff] }
   0x3   :  { %1036 = vmatpush3.msra.mxu0 %v56_v0  ;;  %v1298_v5 = vld [vmem:[%s1514_s5 + $0x28] sm:$0xff]  ;;  %176 = vrot.lane.b32.xlu0 %v1293_v4, %s1188_s30  ;;  %v1308_v7 = vld [vmem:[%s1514_s5 + $0x30] sm:$0xff] }
   0x4   :  { %1037 = vmatprep.subr.mxu0 %v55_v1  ;;  %172 = vrot.lane.b32.xlu1 %v1298_v5, %s1188_s30 }
   0x5   :  { %1038 = vmatpush3.msra.mxu0 %v55_v1 }
   0x6   :  { %20 = vsyncpa [#allocation3], 0  ;;  %1039 = vmatprep.subr.mxu0 %v54_v3  ;;  %v1313_v8 = vld [vmem:[%s1514_s5 + $0x20] sm:$0xff]  ;;  %v1318_v9 = vld [vmem:[%s1509_s0 + $0x8] sm:$0xff]  ;;  %vm349_vm1 = vcmask 523264   ;;  %s1191_s17 = smov [#allocation2]  }
   0x7   :  { %1040 = vmatpush3.msra.mxu0 %v54_v3  ;;  %174 = vrot.lane.b32.xlu0 %v1308_v7, %s1188_s30  ;;  %v149_v10 = vld [vmem:[%s1514_s5 + $0x18] sm:$0xff]  ;;  %v148_v11 = vld [vmem:[%s1514_s5 + $0x10] sm:$0xff]  ;;  %v147_v12 = vld [vmem:[%s1514_s5 + $0x8] sm:$0xff]  ;;  %s936_s18 = sshll.u32 %s1191_s17, 4  ;;  %s937_s18 = int_to_ptr.vmem [resolvable:$true] %s936_s18 }
   0x8   :  { %1041 = vmatprep.subr.mxu0 %v53_v6  ;;  %170 = vrot.lane.b32.xlu1 %v1313_v8, %s1188_s30  ;;  %v146_v13 = vld [vmem:[%s1514_s5] sm:$0xff]  ;;  %v227_v43 = vld [vmem:[%s1515_s6 + $0x8] sm:$0xff]  ;;  %s1166_s19 = scalar_lea.vmem %s937_s18, 256  ;;  %p1171_p1 = scmp.lt.s32.totalorder %s937_s18, %s937_s18 }
   0x9   :  { %1042 = vmatpush3.msra.mxu0 %v53_v6  ;;  %v947_v16 = vld [vmem:[%s1516_s7] ss:$0 sm:$0xff]  ;;  %s1190_s7 = smov 64   ;;  %p1167_p0 = scmp.ne.s32.totalorder %s937_s18, %s1166_s19 }
   0xa   :  { %1044 = vmatmul.mubr.msk.f32.vlgmr.msra.gmra.mxu0 %vm64_vm0, %v1318_v9  ;;  %1065 = vmatprep.subr.mxu0 %v1293_v4  ;;  %v226_v45 = vld [vmem:[%s1515_s6] sm:$0xff]  ;;  %p1172_p2 = scmp.lt.s32.totalorder %s1166_s19, %s1166_s19 }
   0xb   :  { %1066 = vmatpush3.msra.mxu0 %v1293_v4  ;;  %168 = vrot.lane.b32.xlu0 %v149_v10, %s1188_s30 }
   0xc   :  { %1067 = vmatprep.subr.mxu0 %v1308_v7  ;;  %166 = vrot.lane.b32.xlu1 %v148_v11, %s1188_s30  ;;  %p1173_p3 = por %p1172_p2, %p1171_p1 }
   0xd   :  { %1068 = vmatpush3.msra.mxu0 %v1308_v7 }
   0xe   :  { %1069 = vmatprep.subr.mxu0 %v1298_v5  ;;  %p1174_p4 = pnand %p1173_p3, %p1167_p0 }
   0xf   :  { %1070 = vmatpush3.msra.mxu0 %v1298_v5  ;;  %164 = vrot.lane.b32.xlu0 %v147_v12, %s1188_s30 }
  0x10   :  { %1071 = vmatprep.subr.mxu0 %v1313_v8  ;;  %162 = vrot.lane.b32.xlu1 %v146_v13, %s1188_s30  ;;  %s1189_s30 = smov 96  }
  0x11   :  { %1072 = vmatpush3.msra.mxu0 %v1313_v8 }
  0x12   :  { %1073 = vmatprep.subr.mxu0 %v149_v10 }
  0x13   :  { %1074 = vmatpush3.msra.mxu0 %v149_v10 }
  0x14   :  { %1075 = vmatprep.subr.mxu0 %v148_v11 }
  0x15   :  { %1076 = vmatpush3.msra.mxu0 %v148_v11 }
  0x16   :  { %1077 = vmatprep.subr.mxu0 %v147_v12 }
  0x17   :  { %1078 = vmatpush3.msra.mxu0 %v147_v12 }
  0x18   :  { %1079 = vmatprep.subr.mxu0 %v146_v13 }
  0x19   :  { %1080 = vmatpush3.msra.mxu0 %v146_v13 }
  0x75   :  { %v177_v14 = vpop.permute.xlu0 %176 }
  0x76   :  { %v173_v15 = vpop.permute.xlu1 %172 }
  0x79   :  { %v175_v17 = vpop.permute.xlu0 %174 }
  0x7a   :  { %v171_v20 = vpop.permute.xlu1 %170 }
  0x7d   :  { %v169_v25 = vpop.permute.xlu0 %168 }
  0x7e   :  { %v167_v27 = vpop.permute.xlu1 %166 }
  0x81   :  { %v165_v30 = vpop.permute.xlu0 %164 }
  0x82   :  { %v163_v32 = vpop.permute.xlu1 %162 }
  0xca   :  { %v1045_v18 = vpop.f32.mrf.mxu0 }
  0xcb   :  { %v1347_v19 = vadd.f32 %v1045_v18, %v947_v16 }
  0xcc   :  { %v137_v21 = vpop.f32.mrf.mxu0 }
  0xcd   :  { %v1349_v22 = vadd.f32 %v947_v16, %v137_v21  ;;  %v193_v23 = vmul.f32 %v177_v14, %v1347_v19  ;;  %v191_v26 = vmul.f32 %v173_v15, %v1347_v19  ;;  %v189_v29 = vmul.f32 %v169_v25, %v1347_v19  ;;  %v557_v21 = vld [vmem:[%s1511_s2 + $0x18] sm:$0xff] }
  0xce   :  { %v187_v33 = vmul.f32 %v165_v30, %v1347_v19 }
  0xcf   :  { %250 = vrot.lane.b32.xlu0 %v193_v23, %s1189_s30  ;;  %1062 = vmatprep.mubr.msk.f32.mxu1 %vm64_vm0, %v1349_v22  ;;  %v192_v24 = vmul.f32 %v175_v17, %v1349_v22  ;;  %v190_v28 = vmul.f32 %v171_v20, %v1349_v22  ;;  %v188_v31 = vmul.f32 %v167_v27, %v1349_v22  ;;  %v555_v23 = vld [vmem:[%s1511_s2 + $0x8] sm:$0xff] }
  0xd0   :  { %v186_v34 = vmul.f32 %v163_v32, %v1349_v22 }
  0xd1   :  { %248 = vrot.lane.b32.xlu1 %v192_v24, %s1189_s30  ;;  %v554_v24 = vld [vmem:[%s1511_s2] sm:$0xff] }
  0xd3   :  { %246 = vrot.lane.b32.xlu0 %v191_v26, %s1189_s30 }
  0xd5   :  { %244 = vrot.lane.b32.xlu1 %v190_v28, %s1189_s30 }
  0xd7   :  { %242 = vrot.lane.b32.xlu0 %v189_v29, %s1189_s30 }
  0xd9   :  { %240 = vrot.lane.b32.xlu1 %v188_v31, %s1189_s30 }
  0xdb   :  { %238 = vrot.lane.b32.xlu0 %v187_v33, %s1189_s30  ;;  %v964_v33 = vld [vmem:[%s1517_s8] ss:$0 sm:$0xff] }
  0xdd   :  { %236 = vrot.lane.b32.xlu1 %v186_v34, %s1189_s30 }
  0xdf   :  { %208 = vrot.lane.b32.xlu0 %v1293_v4, %s1190_s7 }
  0xe1   :  { %206 = vrot.lane.b32.xlu1 %v1308_v7, %s1190_s7 }
  0xe3   :  { %204 = vrot.lane.b32.xlu0 %v1298_v5, %s1190_s7 }
  0xe5   :  { %202 = vrot.lane.b32.xlu1 %v1313_v8, %s1190_s7 }
  0xe7   :  { %200 = vrot.lane.b32.xlu0 %v149_v10, %s1190_s7 }
  0xe9   :  { %198 = vrot.lane.b32.xlu1 %v148_v11, %s1190_s7 }
  0xeb   :  { %196 = vrot.lane.b32.xlu0 %v147_v12, %s1190_s7 }
  0xed   :  { %194 = vrot.lane.b32.xlu1 %v146_v13, %s1190_s7 }
 0x141   :  { %v251_v35 = vpop.permute.xlu0 %250 }
 0x142   :  { %1046 = vmatprep.subr.msk.mxu1 %vm64_vm0, %v251_v35 }
 0x143   :  { %1047 = vmatpush3.xpose.msk.msra.mxu1 %vm64_vm0, %v251_v35  ;;  %v249_v36 = vpop.permute.xlu1 %248 }
 0x144   :  { %1048 = vmatprep.subr.msk.mxu1 %vm64_vm0, %v249_v36 }
 0x145   :  { %v247_v37 = vpop.permute.xlu0 %246 }
 0x147   :  { %1049 = vmatpush3.xpose.msk.msra.mxu1 %vm64_vm0, %v249_v36  ;;  %v245_v38 = vpop.permute.xlu1 %244 }
 0x148   :  { %1050 = vmatprep.subr.msk.mxu1 %vm64_vm0, %v247_v37 }
 0x149   :  { %v243_v39 = vpop.permute.xlu0 %242 }
 0x14b   :  { %1051 = vmatpush3.xpose.msk.msra.mxu1 %vm64_vm0, %v247_v37  ;;  %v241_v40 = vpop.permute.xlu1 %240 }
 0x14c   :  { %1052 = vmatprep.subr.msk.mxu1 %vm64_vm0, %v245_v38 }
 0x14d   :  { %v239_v41 = vpop.permute.xlu0 %238 }
 0x14f   :  { %1053 = vmatpush3.xpose.msk.msra.mxu1 %vm64_vm0, %v245_v38  ;;  %v237_v42 = vpop.permute.xlu1 %236 }
 0x150   :  { %1054 = vmatprep.subr.msk.mxu1 %vm64_vm0, %v243_v39 }
 0x151   :  { %v209_v53 = vpop.permute.xlu0 %208 }
 0x152   :  { %v225_v58 = vmul.f32 %v209_v53, %v1347_v19  ;;  %v693_v53 = vld [vmem:[%s1512_s3] sm:$0xff] }
 0x153   :  { %1055 = vmatpush3.xpose.msk.msra.mxu1 %vm64_vm0, %v243_v39  ;;  %v207_v51 = vpop.permute.xlu1 %206 }
 0x154   :  { %1056 = vmatprep.subr.msk.mxu1 %vm64_vm0, %v241_v40  ;;  %v224_v54 = vmul.f32 %v207_v51, %v1349_v22  ;;  %v695_v51 = vld [vmem:[%s1512_s3 + $0x10] sm:$0xff] }
 0x155   :  { %v205_v56 = vpop.permute.xlu0 %204 }
 0x156   :  { %v223_v62 = vmul.f32 %v205_v56, %v1347_v19  ;;  %v792_v56 = vld [vmem:[%s1513_s4 + $0x28] sm:$0xff] }
 0x157   :  { %1057 = vmatpush3.xpose.msk.msra.mxu1 %vm64_vm0, %v241_v40  ;;  %v203_v52 = vpop.permute.xlu1 %202 }
 0x158   :  { %1058 = vmatprep.subr.msk.mxu1 %vm64_vm0, %v239_v41  ;;  %v222_v57 = vmul.f32 %v203_v52, %v1349_v22  ;;  %v694_v52 = vld [vmem:[%s1512_s3 + $0x8] sm:$0xff] }
 0x159   :  { %v201_v61 = vpop.permute.xlu0 %200 }
 0x15a   :  { %v221_v0 = vmul.f32 %v201_v61, %v1347_v19 }
 0x15b   :  { %1059 = vmatpush3.xpose.msk.msra.mxu1 %vm64_vm0, %v239_v41  ;;  %v199_v55 = vpop.permute.xlu1 %198 }
 0x15c   :  { %1060 = vmatprep.subr.msk.mxu1 %vm64_vm0, %v237_v42  ;;  %v220_v59 = vmul.f32 %v199_v55, %v1349_v22  ;;  %v793_v55 = vld [vmem:[%s1513_s4 + $0x30] sm:$0xff] }
 0x15d   :  { %v197_v1 = vpop.permute.xlu0 %196 }
 0x15e   :  { %v219_v3 = vmul.f32 %v197_v1, %v1347_v19  ;;  %v967_v1 = vld [vmem:[%s1520_s11] ss:$0 sm:$0xff] }
 0x15f   :  { %1061 = vmatpush3.xpose.msk.msra.mxu1 %vm64_vm0, %v237_v42  ;;  %v195_v60 = vpop.permute.xlu1 %194 }
 0x160   :  { %v218_v63 = vmul.f32 %v195_v60, %v1349_v22  ;;  %1103 = vmatprep.subr.mxu1 %v557_v21  ;;  %v556_v22 = vld [vmem:[%s1511_s2 + $0x10] sm:$0xff] }
 0x162   :  { %1063 = vmatmul.mubr.msk.f32.vlgmr.msra.gmra.mxu1 %vm64_vm0, %v1347_v19 }
 0x163   :  { %1104 = vmatpush3.msra.mxu1 %v557_v21 }
 0x164   :  { %1105 = vmatprep.subr.mxu1 %v556_v22 }
 0x165   :  { %1106 = vmatpush3.msra.mxu1 %v556_v22 }
 0x166   :  { %1107 = vmatprep.subr.mxu1 %v555_v23 }
 0x167   :  { %1108 = vmatpush3.msra.mxu1 %v555_v23  ;;  %v972_v23 = vld [vmem:[%s1519_s10] ss:$0 sm:$0xff] }
 0x168   :  { %1109 = vmatprep.subr.mxu1 %v554_v24 }
 0x169   :  { %1110 = vmatpush3.msra.mxu1 %v554_v24 }
 0x222   :  { %v1064_v44 = vpop.f32.mrf.mxu1 }
 0x223   :  { %v346_v46 = vadd.f32 %v1064_v44, %v227_v43 }
 0x224   :  { %v340_v47 = vpop.f32.mrf.mxu1 }
 0x225   :  { %v341_v48 = vadd.f32 %v340_v47, %v226_v45  ;;  %v353_v49 = vsel %vm349_vm1, %v346_v46, -inf }
 0x226   :  { %354 = vmax.xlane.f32.xlu1 %v353_v49 }
 0x227   :  { %v350_v50 = vsel %vm349_vm1, %v341_v48, -inf }
 0x228   :  { %351 = vmax.xlane.f32.xlu0 %v350_v50 }
 0x237   :  { %463 = vrot.lane.b32.xlu1 %v224_v54, %s1190_s7  ;;  %v794_v54 = vld [vmem:[%s1513_s4 + $0x38] sm:$0xff] }
 0x238   :  { %1125 = vmatprep.subr.mxu1 %v794_v54 }
 0x23b   :  { %459 = vrot.lane.b32.xlu1 %v222_v57, %s1190_s7  ;;  %v791_v57 = vld [vmem:[%s1513_s4 + $0x20] sm:$0xff] }
 0x23e   :  { %465 = vrot.lane.b32.xlu0 %v225_v58, %s1190_s7 }
 0x23f   :  { %455 = vrot.lane.b32.xlu1 %v220_v59, %s1190_s7 }
 0x242   :  { %461 = vrot.lane.b32.xlu0 %v223_v62, %s1190_s7 }
 0x243   :  { %451 = vrot.lane.b32.xlu1 %v218_v63, %s1190_s7 }
 0x246   :  { %457 = vrot.lane.b32.xlu0 %v221_v0, %s1190_s7 }
 0x24a   :  { %453 = vrot.lane.b32.xlu0 %v219_v3, %s1190_s7 }
 0x2af   :  { %v355_v4 = vpop.xlane.xlu1 %354 }
 0x2b0   :  { %v357_v5 = vsub.f32 %v346_v46, %v355_v4  ;;  %v968_v4 = vld [vmem:[%s1521_s12] ss:$0 sm:$0xff] }
 0x2b1   :  { %v352_v6 = vpop.xlane.xlu0 %351 }
 0x2b2   :  { %v356_v7 = vsub.f32 %v341_v48, %v352_v6  ;;  %v360_v8 = vmul.f32 1.442695, %v357_v5 }
 0x2b3   :  { %v464_v12 = vpop.permute.xlu1 %463 }
 0x2b4   :  { %v358_v10 = vmul.f32 1.442695, %v356_v7 }
 0x2b5   :  { %v466_v11 = vpop.permute.xlu0 %465 }
 0x2b6   :  { %1150 = vpow2.f32 %v358_v10  ;;  %1084 = vmatprep.subr.mxu0 %v466_v11 }
 0x2b7   :  { %1152 = vpow2.f32 %v360_v8  ;;  %v460_v16 = vpop.permute.xlu1 %459 }
 0x2b9   :  { %v462_v15 = vpop.permute.xlu0 %461 }
 0x2bb   :  { %v456_v18 = vpop.permute.xlu1 %455 }
 0x2bd   :  { %v458_v17 = vpop.permute.xlu0 %457 }
 0x2bf   :  { %v452_v20 = vpop.permute.xlu1 %451 }
 0x2c1   :  { %v454_v19 = vpop.permute.xlu0 %453 }
 0x2c3   :  { %v1151_v13 = vpop.eup %1150 }
 0x2c4   :  { %v1153_v14 = vpop.eup %1152  ;;  %1081 = vmatprep.mubr.msk.f32.mxu0 %vm349_vm1, %v1151_v13 }
 0x2c5   :  { %1082 = vmatmul.mubr.msk.f32.vlgmr.msra.gmra.mxu0 %vm349_vm1, %v1153_v14 }
 0x2c6   :  { %1085 = vmatpush3.msra.mxu0 %v466_v11  ;;  %1100 = vmatprep.mubr.msk.f32.mxu0 %vm349_vm1, %v1151_v13  ;;  %v789_v13 = vld [vmem:[%s1513_s4 + $0x10] sm:$0xff] }
 0x2c7   :  { %1086 = vmatprep.subr.mxu0 %v464_v12 }
 0x2c8   :  { %1087 = vmatpush3.msra.mxu0 %v464_v12  ;;  %v790_v12 = vld [vmem:[%s1513_s4 + $0x18] sm:$0xff] }
 0x2c9   :  { %1088 = vmatprep.subr.mxu0 %v462_v15 }
 0x2ca   :  { %1089 = vmatpush3.msra.mxu0 %v462_v15  ;;  %v787_v15 = vld [vmem:[%s1513_s4] sm:$0xff] }
 0x2cb   :  { %1090 = vmatprep.subr.mxu0 %v460_v16 }
 0x2cc   :  { %1091 = vmatpush3.msra.mxu0 %v460_v16  ;;  %v969_v16 = vld [vmem:[%s1518_s9] ss:$0 sm:$0xff] }
 0x2cd   :  { %1092 = vmatprep.subr.mxu0 %v458_v17 }
 0x2ce   :  { %1093 = vmatpush3.msra.mxu0 %v458_v17 }
 0x2cf   :  { %1094 = vmatprep.subr.mxu0 %v456_v18 }
 0x2d0   :  { %1095 = vmatpush3.msra.mxu0 %v456_v18 }
 0x2d1   :  { %1096 = vmatprep.subr.mxu0 %v454_v19 }
 0x2d2   :  { %1097 = vmatpush3.msra.mxu0 %v454_v19 }
 0x2d3   :  { %1098 = vmatprep.subr.mxu0 %v452_v20 }
 0x2d4   :  { %1099 = vmatpush3.msra.mxu0 %v452_v20 }
 0x2d5   :  { %1101 = vmatmul.mubr.msk.f32.vlgmr.msra.gmra.mxu0 %vm349_vm1, %v1153_v14  ;;  %v788_v14 = vld [vmem:[%s1513_s4 + $0x8] sm:$0xff] }
 0x385   :  { %v1083_v25 = vpop.f32.mrf.mxu0 }
 0x387   :  { %v434_v26 = vpop.f32.mrf.mxu0 }
 0x388   :  { %1154 = vrcp.f32 %v434_v26 }
 0x389   :  { %1156 = vrcp.f32 %v1083_v25 }
 0x395   :  { %v1155_v27 = vpop.eup %1154  ;;  %v1102_v28 = vpop.f32.mrf.mxu0 }
 0x396   :  { %v1157_v29 = vpop.eup %1156 }
 0x397   :  { %v541_v30 = vpop.f32.mrf.mxu0  ;;  %v553_v32 = vmul.f32 %v1157_v29, %v1102_v28 }
 0x398   :  { %v551_v31 = vmul.f32 %v1155_v27, %v541_v30 }
 0x39a   :  { %1111 = vmatprep.mubr.msk.f32.mxu1 %vm64_vm0, %v551_v31 }
 0x39b   :  { %1112 = vmatmul.mubr.msk.f32.vlgmr.msra.gmra.mxu1 %vm64_vm0, %v553_v32 }
 0x39c   :  { %1126 = vmatpush3.msra.mxu1 %v794_v54 }
 0x39d   :  { %1127 = vmatprep.subr.mxu1 %v793_v55 }
 0x39e   :  { %1128 = vmatpush3.msra.mxu1 %v793_v55 }
 0x39f   :  { %1129 = vmatprep.subr.mxu1 %v792_v56 }
 0x3a0   :  { %1130 = vmatpush3.msra.mxu1 %v792_v56 }
 0x3a1   :  { %1131 = vmatprep.subr.mxu1 %v791_v57 }
 0x3a2   :  { %1132 = vmatpush3.msra.mxu1 %v791_v57 }
 0x3a3   :  { %1133 = vmatprep.subr.mxu1 %v790_v12 }
 0x3a4   :  { %1134 = vmatpush3.msra.mxu1 %v790_v12 }
 0x3a5   :  { %1135 = vmatprep.subr.mxu1 %v789_v13 }
 0x3a6   :  { %1136 = vmatpush3.msra.mxu1 %v789_v13 }
 0x3a7   :  { %1137 = vmatprep.subr.mxu1 %v788_v14 }
 0x3a8   :  { %1138 = vmatpush3.msra.mxu1 %v788_v14 }
 0x3a9   :  { %1139 = vmatprep.subr.mxu1 %v787_v15 }
 0x3aa   :  { %1140 = vmatpush3.msra.mxu1 %v787_v15 }
 0x45b   :  { %v1113_v34 = vpop.f32.mrf.mxu1 }
 0x45c   :  { %v643_v35 = vadd.f32 %v1113_v34, %v964_v33 }
 0x45d   :  { %v637_v36 = vpop.f32.mrf.mxu1 }
 0x45e   :  { %v638_v37 = vadd.f32 %v964_v33, %v637_v36  ;;  %v647_v38 = vadd.f32 %v643_v35, %v1318_v9 }
 0x460   :  { %v653_v39 = vsel %vm64_vm0, %v647_v38, 0.0  ;;  %v646_v40 = vadd.f32 %v638_v37, %v1283_v2  ;;  %v696_v2 = vld [vmem:[%s1512_s3 + $0x18] sm:$0xff] }
 0x461   :  { %654 = vadd.xlane.f32.xlu1 %v653_v39  ;;  %1114 = vmatprep.subr.mxu0 %v696_v2 }
 0x462   :  { %v650_v41 = vsel %vm64_vm0, %v646_v40, 0.0  ;;  %1115 = vmatpush3.msra.mxu0 %v696_v2  ;;  %v976_v2 = vld [vmem:[%s1523_s14] ss:$0 sm:$0xff] }
 0x463   :  { %651 = vadd.xlane.f32.xlu0 %v650_v41  ;;  %1116 = vmatprep.subr.mxu0 %v695_v51 }
 0x464   :  { %1117 = vmatpush3.msra.mxu0 %v695_v51 }
 0x465   :  { %1118 = vmatprep.subr.mxu0 %v694_v52 }
 0x466   :  { %1119 = vmatpush3.msra.mxu0 %v694_v52 }
 0x467   :  { %1120 = vmatprep.subr.mxu0 %v693_v53 }
 0x468   :  { %1121 = vmatpush3.msra.mxu0 %v693_v53 }
 0x4ea   :  { %v655_v42 = vpop.xlane.xlu1 %654 }
 0x4eb   :  { %v658_v43 = vmul.f32 0.03125, %v655_v42 }
 0x4ec   :  { %v652_v44 = vpop.xlane.xlu0 %651 }
 0x4ed   :  { %v657_v45 = vmul.f32 0.03125, %v652_v44  ;;  %v660_v46 = vsub.f32 %v647_v38, %v658_v43 }
 0x4ef   :  { %v659_v47 = vsub.f32 %v646_v40, %v657_v45  ;;  %v662_v50 = vmul.f32 %v660_v46, %v660_v46 }
 0x4f1   :  { %v661_v48 = vmul.f32 %v659_v47, %v659_v47  ;;  %v666_v9 = vsel %vm64_vm0, %v662_v50, 0.0 }
 0x4f3   :  { %v663_v49 = vsel %vm64_vm0, %v661_v48, 0.0 }
 0x4f4   :  { %664 = vadd.xlane.f32.xlu0 %v663_v49  ;;  %v975_v49 = vld [vmem:[%s1522_s13] ss:$0 sm:$0xff] }
 0x4f8   :  { %667 = vadd.xlane.f32.xlu0 %v666_v9 }
 0x57d   :  { %v665_v58 = vpop.xlane.xlu0 %664 }
 0x57e   :  { %v669_v59 = vmul.f32 0.03125, %v665_v58 }
 0x580   :  { %v671_v60 = vadd.f32 1e-05, %v669_v59 }
 0x581   :  { %v668_v61 = vpop.xlane.xlu0 %667 }
 0x582   :  { %1158 = vrsqrt.f32 %v671_v60  ;;  %v670_v62 = vmul.f32 0.03125, %v668_v61 }
 0x584   :  { %v672_v63 = vadd.f32 1e-05, %v670_v62 }
 0x586   :  { %1160 = vrsqrt.f32 %v672_v63 }
 0x58f   :  { %v1159_v0 = vpop.eup %1158 }
 0x590   :  { %v675_v3 = vmul.f32 %v1159_v0, %v659_v47 }
 0x592   :  { %v683_v5 = vmul.f32 %v967_v1, %v675_v3 }
 0x593   :  { %v1161_v6 = vpop.eup %1160 }
 0x594   :  { %v676_v7 = vmul.f32 %v1161_v6, %v660_v46  ;;  %v691_v8 = vadd.f32 %v968_v4, %v683_v5 }
 0x596   :  { %v684_v10 = vmul.f32 %v967_v1, %v676_v7  ;;  %1122 = vmatprep.mubr.msk.f32.mxu0 %vm64_vm0, %v691_v8 }
 0x598   :  { %v692_v11 = vadd.f32 %v968_v4, %v684_v10 }
 0x59a   :  { %1123 = vmatmul.mubr.msk.f32.vlgmr.msra.gmra.mxu0 %vm64_vm0, %v692_v11 }
 0x65a   :  { %v1124_v17 = vpop.f32.mrf.mxu0 }
 0x65b   :  { %v782_v18 = vadd.f32 %v1124_v17, %v969_v16 }
 0x65c   :  { %v776_v19 = vpop.f32.mrf.mxu0 }
 0x65d   :  { %v777_v20 = vadd.f32 %v969_v16, %v776_v19  ;;  %v786_v22 = vmax.f32 %v782_v18, 0.0 }
 0x65f   :  { %v785_v21 = vmax.f32 %v777_v20, 0.0 }
 0x661   :  { %1141 = vmatprep.mubr.msk.f32.mxu1 %vm349_vm1, %v785_v21 }
 0x662   :  { %1142 = vmatmul.mubr.msk.f32.vlgmr.msra.gmra.mxu1 %vm349_vm1, %v786_v22 }
 0x722   :  { %v1143_v24 = vpop.f32.mrf.mxu1 }
 0x723   :  { %v880_v25 = vadd.f32 %v1143_v24, %v972_v23 }
 0x724   :  { %v874_v26 = vpop.f32.mrf.mxu1 }
 0x725   :  { %v875_v27 = vadd.f32 %v972_v23, %v874_v26  ;;  %v884_v28 = vadd.f32 %v880_v25, %v692_v11 }
 0x727   :  { %v890_v29 = vsel %vm64_vm0, %v884_v28, 0.0  ;;  %v883_v30 = vadd.f32 %v875_v27, %v691_v8 }
 0x728   :  { %891 = vadd.xlane.f32.xlu0 %v890_v29 }
 0x729   :  { %v887_v31 = vsel %vm64_vm0, %v883_v30, 0.0 }
 0x72a   :  { %888 = vadd.xlane.f32.xlu1 %v887_v31 }
 0x7b1   :  { %v892_v32 = vpop.xlane.xlu0 %891 }
 0x7b2   :  { %v894_v33 = vmul.f32 0.03125, %v892_v32 }
 0x7b3   :  { %v889_v34 = vpop.xlane.xlu1 %888 }
 0x7b4   :  { %v896_v35 = vsub.f32 %v884_v28, %v894_v33  ;;  %v893_v36 = vmul.f32 0.03125, %v889_v34 }
 0x7b6   :  { %v895_v37 = vsub.f32 %v883_v30, %v893_v36  ;;  %v898_v38 = vmul.f32 %v896_v35, %v896_v35 }
 0x7b8   :  { %v902_v39 = vsel %vm64_vm0, %v898_v38, 0.0  ;;  %v897_v40 = vmul.f32 %v895_v37, %v895_v37 }
 0x7b9   :  { %903 = vadd.xlane.f32.xlu0 %v902_v39 }
 0x7ba   :  { %v899_v41 = vsel %vm64_vm0, %v897_v40, 0.0 }
 0x7bb   :  { %900 = vadd.xlane.f32.xlu1 %v899_v41 }
 0x842   :  { %v904_v42 = vpop.xlane.xlu0 %903 }
 0x843   :  { %v906_v43 = vmul.f32 0.03125, %v904_v42 }
 0x844   :  { %v901_v44 = vpop.xlane.xlu1 %900 }
 0x845   :  { %v908_v45 = vadd.f32 1e-05, %v906_v43  ;;  %v905_v46 = vmul.f32 0.03125, %v901_v44 }
 0x847   :  { %1162 = vrsqrt.f32 %v908_v45  ;;  %v907_v47 = vadd.f32 1e-05, %v905_v46 }
 0x849   :  { %1164 = vrsqrt.f32 %v907_v47 }
 0x854   :  { %v1163_v48 = vpop.eup %1162 }
 0x855   :  { %v912_v50 = vmul.f32 %v1163_v48, %v896_v35 }
 0x856   :  { %v1165_v9 = vpop.eup %1164 }
 0x857   :  { %v911_v51 = vmul.f32 %v1165_v9, %v895_v37  ;;  %v920_v52 = vmul.f32 %v975_v49, %v912_v50 }
 0x859   :  { %v919_v53 = vmul.f32 %v975_v49, %v911_v51  ;;  %v928_v54 = vadd.f32 %v976_v2, %v920_v52 }
 0x85b   :  { %v927_v55 = vadd.f32 %v976_v2, %v919_v53  ;;  %930 = vst.msk [vmem:[#allocation2 + $0x8] sm:$0xff] %vm64_vm0, %v928_v54 }
 0x85d   :  { %929 = vst.msk [vmem:[#allocation2] sm:$0xff] %vm64_vm0, %v927_v55 }
 0x85e   :  { %1177 = shalt.err (!%p1174_p4)
}
 0x85f   :  { %s1192_s13 = smov 128   ;;  %s1193_s14 = smov 8  }
 0x860   :  { %942 = dma.vmem_to_hbm [thread:$0]  %s937_s18, 256, %s1524_s15, [#allocation3], %s1192_s13, %s1192_s13, %s1193_s14  }
 0x861   :  { %1186 = dma.done.wait [#allocation3], 256  }
 0x862   :  { %1187 = vsyncadd [#allocation3], 4294967040 }
 0x863   :  { %946 = vsyncpa [#allocation3], 1 }

</bundles_post_ra>
